<compile_context>
chip_gen: v7x
topology: tpu7x:2x2x1
jax: 0.10.0
libtpu: 0.0.40
codegen_flags: <defaults>
</compile_context>

<pallas_src>
import jax
import jax.numpy as jnp
from jax.experimental import pallas as pl
from jax.experimental.pallas import tpu as pltpu


# --------------------------------------------------------------------------- #
# Kernel
# --------------------------------------------------------------------------- #
def _ffn_kernel(x_ref, w1_ref, w3_ref, w2_ref, o_ref, acc_ref):
    # x_ref:  (tm, dim)    token tile
    # w1_ref: (dim, tn)    column-tile of w1^T (canonical NN layout)
    # w3_ref: (dim, tn)    column-tile of w3^T
    # w2_ref: (tn, dim)    row-tile of w2^T
    # o_ref:  (tm, dim)    output tile (resident across the hidden axis)
    # acc_ref: VMEM (tm, dim) f32 accumulator over hidden tiles
    j = pl.program_id(1)
    last = pl.num_programs(1) - 1

    @pl.when(j == 0)
    def _():
        acc_ref[...] = jnp.zeros_like(acc_ref)

    x = x_ref[...]
    # Canonical NN matmuls: contract x's minor dim against the weight tile's
    # second-to-last dim -- no in-kernel weight transposes.
    h1 = jnp.dot(x, w1_ref[...], preferred_element_type=jnp.float32)  # (tm,tn)
    h3 = jnp.dot(x, w3_ref[...], preferred_element_type=jnp.float32)  # (tm,tn)
    # SiLU gate in f32 (sigmoid runs on the EUP slot, hidden under MXU work).
    gated = (h1 * jax.nn.sigmoid(h1)) * h3                            # f32

    part = jnp.dot(gated.astype(w2_ref.dtype), w2_ref[...],
                   preferred_element_type=jnp.float32)                # (tm,dim)

    @pl.when(j < last)
    def _():
        acc_ref[...] += part

    @pl.when(j == last)
    def _():
        # Fused epilogue: avoid the extra acc store + reload on the last step.
        o_ref[...] = (acc_ref[...] + part).astype(o_ref.dtype)


# --------------------------------------------------------------------------- #
# Host-side helpers
# --------------------------------------------------------------------------- #
def prepare_ffn_weights(w1, w2, w3, compute_dtype=None):
    """PyTorch nn.Linear (out, in) weights -> canonical NN (in, out) layout.

    Call this ONCE per model (outside the per-token-step path), optionally
    casting to bf16 for full MXU throughput.
      returns w1_t, w2_t, w3_t with shapes (dim,hidden), (hidden,dim), (dim,hidden)
    """
    w1_t, w2_t, w3_t = w1.T, w2.T, w3.T
    if compute_dtype is not None:
        w1_t = w1_t.astype(compute_dtype)
        w2_t = w2_t.astype(compute_dtype)
        w3_t = w3_t.astype(compute_dtype)
    return w1_t, w2_t, w3_t


def _round_up(v, mult):
    return ((v + mult - 1) // mult) * mult


def _largest_tile_divisor(hidden, target):
    """Largest divisor of `hidden` that is a multiple of 128 and <= target."""
    best = None
    cand = 128
    upper = min(hidden, max(target, 0))
    while cand <= upper:
        if hidden % cand == 0:
            best = cand
        cand += 128
    # TODO(synk): hidden dims with no multiple-of-128 divisor fall back to the
    # full hidden dimension (fine for small models; pad hidden for huge ones).
    return best if best is not None else hidden


def _vmem_capacity_bytes():
    try:
        return int(pltpu.get_tpu_info().vmem_capacity_bytes)
    except Exception:
        return 128 << 20  # v5e / v6e default


def feed_forward(x, w1_t, w2_t, w3_t, *, tm=None, tn=None):
    """SwiGLU FFN: (silu(x @ w1_t) * (x @ w3_t)) @ w2_t.

    x: (..., dim).  Weights already in canonical layout (prepare_ffn_weights):
      w1_t, w3_t: (dim, hidden);  w2_t: (hidden, dim).
    """
    orig_shape = x.shape
    dim = orig_shape[-1]
    hidden = w1_t.shape[1]
    assert w1_t.shape == (dim, hidden) and w3_t.shape == (dim, hidden)
    assert w2_t.shape == (hidden, dim)

    x2d = x.reshape(-1, dim)
    m = x2d.shape[0]

    x_itemsize = jnp.dtype(x.dtype).itemsize
    w_itemsize = jnp.dtype(w1_t.dtype).itemsize
    sub = {4: 8, 2: 16, 1: 32}.get(x_itemsize, 8)   # dtype sublane multiple

    vmem_cap = _vmem_capacity_bytes()
    small_vmem = vmem_cap <= (80 << 20)             # v7x-class (64 MiB) part
    limit_cap = vmem_cap - (8 << 20)                # headroom below physical

    # --- token (row) tiling: big tiles for arithmetic intensity -------------
    if tm is None:
        tm = 512
    tm = min(tm, _round_up(m, sub))
    tm = max(sub, _round_up(tm, sub))
    # Keep >= 2 token tiles when m is compute-relevant (feeds both v7x TCs).
    if m >= 256 and pl.cdiv(m, tm) == 1:
        tm = max(sub, _round_up(pl.cdiv(m, 2), sub))

    # --- hidden tiling: stream weight tiles ----------------------------------
    if tn is None:
        tn = 512 if small_vmem else 1024
    tn = _largest_tile_divisor(hidden, min(tn, hidden))

    # x block index is invariant along j -> single-buffer on small-VMEM parts.
    x_bufs = 1 if (small_vmem and hasattr(pl, "Buffered")) else 2

    def _budget(tm_, tn_):
        w = 2 * 3 * dim * tn_ * w_itemsize       # w1/w3/w2 tiles, double-buffered
        xa = x_bufs * tm_ * dim * x_itemsize     # x tile
        o = 2 * tm_ * dim * x_itemsize           # output tile
        acc = tm_ * dim * 4                      # f32 accumulator scratch
        return w + xa + o + acc

    # Shrink tn (weights dominate), then tm, until the working set fits VMEM.
    while _budget(tm, tn) > limit_cap:
        if tn > 128:
            smaller = _largest_tile_divisor(hidden, tn - 128)
            if smaller < tn:
                tn = smaller
                continue
        if tm > sub:
            tm = max(sub, _round_up(tm // 2, sub))
            continue
        break

    m_pad = pl.cdiv(m, tm) * tm
    if m_pad != m:
        x2d = jnp.pad(x2d, ((0, m_pad - m), (0, 0)))
    grid = (m_pad // tm, hidden // tn)

    vmem_limit = int(min(max(int(_budget(tm, tn) * 1.25) + (8 << 20),
                             32 << 20),
                         limit_cap))

    x_spec_kwargs = {}
    if x_bufs == 1:
        x_spec_kwargs["pipeline_mode"] = pl.Buffered(1)

    out = pl.pallas_call(
        _ffn_kernel,
        out_shape=jax.ShapeDtypeStruct((m_pad, dim), x.dtype),
        grid_spec=pltpu.PrefetchScalarGridSpec(
            num_scalar_prefetch=0,
            grid=grid,
            in_specs=[
                pl.BlockSpec((tm, dim), lambda i, j: (i, 0), **x_spec_kwargs),
                pl.BlockSpec((dim, tn), lambda i, j: (0, j)),   # w1_t cols
                pl.BlockSpec((dim, tn), lambda i, j: (0, j)),   # w3_t cols
                pl.BlockSpec((tn, dim), lambda i, j: (j, 0)),   # w2_t rows
            ],
            out_specs=pl.BlockSpec((tm, dim), lambda i, j: (i, 0)),
            scratch_shapes=[pltpu.VMEM((tm, dim), jnp.float32)],
        ),
        compiler_params=pltpu.CompilerParams(
            dimension_semantics=("parallel", "arbitrary"),
            vmem_limit_bytes=vmem_limit,
        ),
    )(x2d, w1_t, w3_t, w2_t)

    if m_pad != m:
        out = out[:m]
    return out.reshape(orig_shape)


# --------------------------------------------------------------------------- #
# Self-test
# --------------------------------------------------------------------------- #
if __name__ == "__main__":
    # Small shapes consistent with TDTransformerArgs: dim=32, hidden_dim=64,
    # batch=2, seq=8.
    batch, seq, dim, hidden_dim = 2, 8, 32, 64

    key = jax.random.PRNGKey(0)
    kx, k1, k2, k3 = jax.random.split(key, 4)

    x = jax.random.normal(kx, (batch, seq, dim), dtype=jnp.float32)
    # Deterministic synthetic weights in PyTorch nn.Linear layout (out, in).
    w1 = jax.random.normal(k1, (hidden_dim, dim), dtype=jnp.float32) * 0.05
    w2 = jax.random.normal(k2, (dim, hidden_dim), dtype=jnp.float32) * 0.05
    w3 = jax.random.normal(k3, (hidden_dim, dim), dtype=jnp.float32) * 0.05

    # One-time weight preparation (transpose to canonical NN layout).
    w1_t, w2_t, w3_t = prepare_ffn_weights(w1, w2, w3)

    def ref_ffn(xx):
        h1 = xx @ w1.T
        h3 = xx @ w3.T
        return ((h1 * jax.nn.sigmoid(h1)) * h3) @ w2.T

    # Case 1: standard batch.
    out = feed_forward(x, w1_t, w2_t, w3_t)
    out = jax.block_until_ready(out)
    assert out.shape == (batch, seq, dim)
    ref = ref_ffn(x)
    # Tolerance accounts for TPU MXU default-precision f32 matmuls.
    assert jnp.allclose(out, ref, atol=2e-3, rtol=2e-2), (
        float(jnp.max(jnp.abs(out - ref))))

    # Case 2: ragged token count (exercises the cdiv + zero-pad path).
    x_odd = jax.random.normal(kx, (3, 5, dim), dtype=jnp.float32)
    out_odd = jax.block_until_ready(feed_forward(x_odd, w1_t, w2_t, w3_t))
    assert out_odd.shape == (3, 5, dim)
    ref_odd = ref_ffn(x_odd)
    assert jnp.allclose(out_odd, ref_odd, atol=2e-3, rtol=2e-2), (
        float(jnp.max(jnp.abs(out_odd - ref_odd))))

    print("KERNEL_OK")
</pallas_src>

<mosaic_0001>
module attributes {stable_mosaic.version = 11 : i64} {
  func.func @_ffn_kernel(%arg0: i32, %arg1: i32, %arg2: memref<16x32xf32, #tpu.memory_space<vmem>>, %arg3: memref<32x64xf32, #tpu.memory_space<vmem>>, %arg4: memref<32x64xf32, #tpu.memory_space<vmem>>, %arg5: memref<64x32xf32, #tpu.memory_space<vmem>>, %arg6: memref<16x32xf32, #tpu.memory_space<vmem>>, %arg7: memref<16x32xf32, #tpu.memory_space<vmem>>) attributes {dimension_semantics = [#tpu.dimension_semantics<parallel>, #tpu.dimension_semantics<arbitrary>], iteration_bounds = array<i64: 1, 1>, scalar_prefetch = 0 : i64, scratch_operands = 1 : i64, tpu.core_type = #tpu.core_type<tc>, window_params = [{transform_indices = @transform_0, window_bounds = array<i64: 16, 32>}, {transform_indices = @transform_1, window_bounds = array<i64: 32, 64>}, {transform_indices = @transform_2, window_bounds = array<i64: 32, 64>}, {transform_indices = @transform_3, window_bounds = array<i64: 64, 32>}, {transform_indices = @transform_4, window_bounds = array<i64: 16, 32>}]} {
    %c0_i32 = arith.constant 0 : i32
    %0 = arith.cmpi eq, %arg1, %c0_i32 : i32
    %1 = arith.extui %0 : i1 to i32
    %c0_i32_0 = arith.constant 0 : i32
    %2 = arith.cmpi ne, %1, %c0_i32_0 : i32
    scf.if %2 {
      %cst_15 = arith.constant 0.000000e+00 : f32
      %23 = vector.broadcast %cst_15 : f32 to vector<16x32xf32>
      %c0_16 = arith.constant 0 : index
      %c0_17 = arith.constant 0 : index
      %24 = vector.load %arg7[%c0_16, %c0_17] : memref<16x32xf32, #tpu.memory_space<vmem>>, vector<16x32xf32>
      tpu.vector_store %arg7[%c0_16, %c0_17], %23 {strides = array<i32>} : memref<16x32xf32, #tpu.memory_space<vmem>>, vector<16x32xf32>,
    } else {
    }
    %c0 = arith.constant 0 : index
    %c0_1 = arith.constant 0 : index
    %3 = vector.load %arg2[%c0, %c0_1] : memref<16x32xf32, #tpu.memory_space<vmem>>, vector<16x32xf32>
    %c0_2 = arith.constant 0 : index
    %c0_3 = arith.constant 0 : index
    %4 = vector.load %arg3[%c0_2, %c0_3] : memref<32x64xf32, #tpu.memory_space<vmem>>, vector<32x64xf32>
    %cst = arith.constant dense<0.000000e+00> : vector<16x64xf32>
    %5 = tpu.matmul %3, %4, %cst {dimension_numbers = #tpu.dot_dimension_numbers<[1], [0], [0], [1], [0, 0, 1, 1], [], []>} : vector<16x32xf32>, vector<32x64xf32>, vector<16x64xf32> -> vector<16x64xf32>
    %c0_4 = arith.constant 0 : index
    %c0_5 = arith.constant 0 : index
    %6 = vector.load %arg4[%c0_4, %c0_5] : memref<32x64xf32, #tpu.memory_space<vmem>>, vector<32x64xf32>
    %cst_6 = arith.constant dense<0.000000e+00> : vector<16x64xf32>
    %7 = tpu.matmul %3, %6, %cst_6 {dimension_numbers = #tpu.dot_dimension_numbers<[1], [0], [0], [1], [0, 0, 1, 1], [], []>} : vector<16x32xf32>, vector<32x64xf32>, vector<16x64xf32> -> vector<16x64xf32>
    %8 = arith.negf %5 : vector<16x64xf32>
    %9 = math.exp %8 : vector<16x64xf32>
    %cst_7 = arith.constant 1.000000e+00 : f32
    %10 = vector.broadcast %cst_7 : f32 to vector<16x64xf32>
    %11 = arith.addf %10, %9 : vector<16x64xf32>
    %12 = arith.divf %10, %11 : vector<16x64xf32>
    %13 = arith.mulf %5, %12 : vector<16x64xf32>
    %14 = arith.mulf %13, %7 : vector<16x64xf32>
    %c0_8 = arith.constant 0 : index
    %c0_9 = arith.constant 0 : index
    %15 = vector.load %arg5[%c0_8, %c0_9] : memref<64x32xf32, #tpu.memory_space<vmem>>, vector<64x32xf32>
    %cst_10 = arith.constant dense<0.000000e+00> : vector<16x32xf32>
    %16 = tpu.matmul %14, %15, %cst_10 {dimension_numbers = #tpu.dot_dimension_numbers<[1], [0], [0], [1], [0, 0, 1, 1], [], []>} : vector<16x64xf32>, vector<64x32xf32>, vector<16x32xf32> -> vector<16x32xf32>
    %c0_i32_11 = arith.constant 0 : i32
    %17 = arith.cmpi slt, %arg1, %c0_i32_11 : i32
    %18 = arith.extui %17 : i1 to i32
    %c0_i32_12 = arith.constant 0 : i32
    %19 = arith.cmpi ne, %18, %c0_i32_12 : i32
    scf.if %19 {
      %c0_15 = arith.constant 0 : index
      %c0_16 = arith.constant 0 : index
      %23 = vector.load %arg7[%c0_15, %c0_16] : memref<16x32xf32, #tpu.memory_space<vmem>>, vector<16x32xf32>
      %24 = arith.addf %23, %16 : vector<16x32xf32>
      %c0_17 = arith.constant 0 : index
      %c0_18 = arith.constant 0 : index
      %25 = vector.load %arg7[%c0_17, %c0_18] : memref<16x32xf32, #tpu.memory_space<vmem>>, vector<16x32xf32>
      tpu.vector_store %arg7[%c0_17, %c0_18], %24 {strides = array<i32>} : memref<16x32xf32, #tpu.memory_space<vmem>>, vector<16x32xf32>,
    } else {
    }
    %c0_i32_13 = arith.constant 0 : i32
    %20 = arith.cmpi eq, %arg1, %c0_i32_13 : i32
    %21 = arith.extui %20 : i1 to i32
    %c0_i32_14 = arith.constant 0 : i32
    %22 = arith.cmpi ne, %21, %c0_i32_14 : i32
    scf.if %22 {
      %c0_15 = arith.constant 0 : index
      %c0_16 = arith.constant 0 : index
      %23 = vector.load %arg7[%c0_15, %c0_16] : memref<16x32xf32, #tpu.memory_space<vmem>>, vector<16x32xf32>
      %24 = arith.addf %23, %16 : vector<16x32xf32>
      %c0_17 = arith.constant 0 : index
      %c0_18 = arith.constant 0 : index
      %25 = vector.load %arg6[%c0_17, %c0_18] : memref<16x32xf32, #tpu.memory_space<vmem>>, vector<16x32xf32>
      tpu.vector_store %arg6[%c0_17, %c0_18], %24 {strides = array<i32>} : memref<16x32xf32, #tpu.memory_space<vmem>>, vector<16x32xf32>,
    } else {
    }
    return
  }
  func.func @transform_0(%arg0: i32, %arg1: i32) -> (i32, i32) {
    %c0_i32 = arith.constant 0 : i32
    %c0_i32_0 = arith.constant 0 : i32
    return %arg0, %c0_i32 : i32, i32
  }
  func.func @transform_1(%arg0: i32, %arg1: i32) -> (i32, i32) {
    %c0_i32 = arith.constant 0 : i32
    %c0_i32_0 = arith.constant 0 : i32
    return %c0_i32, %arg1 : i32, i32
  }
  func.func @transform_2(%arg0: i32, %arg1: i32) -> (i32, i32) {
    %c0_i32 = arith.constant 0 : i32
    %c0_i32_0 = arith.constant 0 : i32
    return %c0_i32, %arg1 : i32, i32
  }
  func.func @transform_3(%arg0: i32, %arg1: i32) -> (i32, i32) {
    %c0_i32 = arith.constant 0 : i32
    %c0_i32_0 = arith.constant 0 : i32
    return %arg1, %c0_i32 : i32, i32
  }
  func.func @transform_4(%arg0: i32, %arg1: i32) -> (i32, i32) {
    %c0_i32 = arith.constant 0 : i32
    %c0_i32_0 = arith.constant 0 : i32
    return %arg0, %c0_i32 : i32, i32
  }
}

</mosaic_0001>

<bundles_post_ra>
// kernel: tpu_custom_call.1
= control target key start
LH: loop header
LB: loop body
LE: loop exit
PB: predicated region body
PF: predicated region fallthrough
CT: control target
= control target key end

     0   :  { %vm22_vm0 = vcmask 261120   ;;  %v472_v5 = vmov 0.0   ;;  %s575_s0 = inlined_call_operand.vmem [shape: f32[16,32], index: 0, kind: input, shape index: {}]   ;;  %s576_s1 = inlined_call_operand.vmem [shape: f32[32,64], index: 1, kind: input, shape index: {}]   ;;  %s577_s2 = inlined_call_operand.vmem [shape: f32[32,64], index: 2, kind: input, shape index: {}]   ;;  %s578_s3 = inlined_call_operand.vmem [shape: f32[64,32], index: 3, kind: input, shape index: {}]   ;;  %s579_s4 = inlined_call_operand.hbm [shape: f32[16,32], index: 4, kind: output, shape index: {}]  }
   0x1   :  { %v27_v0 = vld [vmem:[%s576_s1] sm:$0xff]  ;;  %v28_v1 = vld [vmem:[%s576_s1 + $0x8] sm:$0xff]  ;;  %v29_v2 = vld [vmem:[%s576_s1 + $0x10] sm:$0xff]  ;;  %23 = vst.msk [vmem:[#allocation2] sm:$0xff] %vm22_vm0, %v472_v5 }
   0x2   :  { %v404_v3 = vpack.c.bf16 %v28_v1, %v27_v0  ;;  %v30_v4 = vld [vmem:[%s576_s1 + $0x18] sm:$0xff]  ;;  %24 = vst.msk [vmem:[#allocation2 + $0x8] sm:$0xff] %vm22_vm0, %v472_v5  ;;  %v25_v6 = vld [vmem:[%s575_s0] sm:$0xff]  ;;  %v114_v9 = vld [vmem:[%s577_s2 + $0x8] sm:$0xff] }
   0x3   :  { %v408_v7 = vpack.c.bf16 %v30_v4, %v29_v2  ;;  %371 = vmatprep.mubr.msk.f32.mxu1 %vm22_vm0, %v25_v6  ;;  %v113_v8 = vld [vmem:[%s577_s2] sm:$0xff] }
   0x4   :  { %405 = vmatprep.subr.bf16.mxu1 %v404_v3 }
   0x5   :  { %9 = vsyncpa [#allocation4], 0  ;;  %407 = vmatpush3.bf16.msra.mxu1 %v404_v3  ;;  %v412_v10 = vpack.c.bf16 %v114_v9, %v113_v8  ;;  %v115_v11 = vld [vmem:[%s577_s2 + $0x10] sm:$0xff]  ;;  %v116_v12 = vld [vmem:[%s577_s2 + $0x18] sm:$0xff]  ;;  %vm216_vm1 = vcmask 523264  }
   0x6   :  { %409 = vmatprep.subr.bf16.mxu1 %v408_v7  ;;  %v26_v13 = vld [vmem:[%s575_s0 + $0x8] sm:$0xff]  ;;  %v416_v14 = vpack.c.bf16 %v116_v12, %v115_v11  ;;  %v208_v15 = vld [vmem:[%s578_s3] sm:$0xff]  ;;  %v210_v18 = vld [vmem:[%s578_s3 + $0x10] sm:$0xff] }
   0x7   :  { %v209_v16 = vld [vmem:[%s578_s3 + $0x8] sm:$0xff]  ;;  %v211_v19 = vld [vmem:[%s578_s3 + $0x18] sm:$0xff]  ;;  %v212_v21 = vld [vmem:[%s578_s3 + $0x20] sm:$0xff] }
   0x8   :  { %v420_v17 = vpack.c.bf16 %v209_v16, %v208_v15  ;;  %v424_v20 = vpack.c.bf16 %v211_v19, %v210_v18  ;;  %v213_v22 = vld [vmem:[%s578_s3 + $0x28] sm:$0xff]  ;;  %v214_v24 = vld [vmem:[%s578_s3 + $0x30] sm:$0xff]  ;;  %v215_v25 = vld [vmem:[%s578_s3 + $0x38] sm:$0xff]  ;;  %s473_s3 = smov [#allocation3]  }
   0x9   :  { %411 = vmatpush3.bf16.msra.mxu1 %v408_v7  ;;  %v428_v23 = vpack.c.bf16 %v213_v22, %v212_v21  ;;  %v432_v26 = vpack.c.bf16 %v215_v25, %v214_v24  ;;  %v312_v43 = vld [vmem:[#allocation2 + $0x8] sm:$0xff]  ;;  %s322_s22 = sshll.u32 %s473_s3, 4  ;;  %v311_v44 = vld [vmem:[#allocation2] sm:$0xff]  ;;  %s323_s22 = int_to_ptr.vmem [resolvable:$true] %s322_s22 }
   0xa   :  { %413 = vmatprep.subr.bf16.mxu1 %v412_v10  ;;  %421 = vmatprep.subr.bf16.mxu0 %v420_v17  ;;  %s448_s23 = scalar_lea.vmem %s323_s22, 256  ;;  %p453_p1 = scmp.lt.s32.totalorder %s323_s22, %s323_s22 }
   0xb   :  { %423 = vmatpush3.bf16.msra.mxu0 %v420_v17  ;;  %p449_p0 = scmp.ne.s32.totalorder %s323_s22, %s448_s23  ;;  %p454_p2 = scmp.lt.s32.totalorder %s448_s23, %s448_s23 }
   0xc   :  { %372 = vmatmul.mubr.msk.f32.vlgmr.msra.gmra.mrb[0].mxu1 %vm22_vm0, %v26_v13  ;;  %425 = vmatprep.subr.bf16.mxu0 %v424_v20 }
   0xd   :  { %415 = vmatpush3.bf16.msra.mxu1 %v412_v10  ;;  %382 = vmatprep.mubr.msk.f32.mxu1 %vm22_vm0, %v25_v6  ;;  %p455_p3 = por %p454_p2, %p453_p1 }
   0xe   :  { %417 = vmatprep.subr.bf16.mxu1 %v416_v14 }
   0xf   :  { %427 = vmatpush3.bf16.msra.mxu0 %v424_v20  ;;  %p456_p4 = pnand %p455_p3, %p449_p0 }
  0x10   :  { %429 = vmatprep.subr.bf16.mxu0 %v428_v23 }
  0x11   :  { %419 = vmatpush3.bf16.msra.mxu1 %v416_v14 }
  0x13   :  { %431 = vmatpush3.bf16.msra.mxu0 %v428_v23 }
  0x14   :  { %383 = vmatmul.mubr.msk.f32.vlgmr.msra.gmra.mrb[2].mxu1 %vm22_vm0, %v26_v13  ;;  %433 = vmatprep.subr.bf16.mxu0 %v432_v26 }
  0x17   :  { %435 = vmatpush3.bf16.msra.mxu0 %v432_v26 }
  0xdf   :  { %v373_v27 = vpop.f32.mrb[0].mxu1 }
  0xe0   :  { %v338_v28 = vmul.f32 -1.442695, %v373_v27  ;;  %v104_v29 = vpop.f32.mrb[1].mxu1 }
  0xe1   :  { %v337_v30 = vmul.f32 -1.442695, %v104_v29 }
  0xe2   :  { %440 = vpow2.f32 %v338_v28 }
  0xe3   :  { %442 = vpow2.f32 %v337_v30 }
  0xe7   :  { %v384_v31 = vpop.f32.mrb[2].mxu1 }
  0xe8   :  { %v183_v32 = vpop.f32.mrb[3].mxu1 }
  0xec   :  { %v441_v33 = vpop.eup %440 }
  0xed   :  { %v443_v34 = vpop.eup %442  ;;  %v199_v35 = vadd.f32 1.0, %v441_v33 }
  0xee   :  { %v198_v36 = vadd.f32 1.0, %v443_v34 }
  0xef   :  { %444 = vrcp.f32 %v199_v35 }
  0xf0   :  { %446 = vrcp.f32 %v198_v36 }
  0xf9   :  { %v445_v37 = vpop.eup %444 }
  0xfa   :  { %v447_v38 = vpop.eup %446  ;;  %v205_v39 = vmul.f32 %v445_v37, %v373_v27 }
  0xfb   :  { %v204_v40 = vmul.f32 %v447_v38, %v104_v29 }
  0xfc   :  { %v207_v41 = vmul.f32 %v384_v31, %v205_v39 }
  0xfd   :  { %v206_v42 = vmul.f32 %v204_v40, %v183_v32 }
  0xff   :  { %401 = vmatprep.mubr.msk.f32.mxu0 %vm216_vm1, %v206_v42 }
 0x100   :  { %402 = vmatmul.mubr.msk.f32.vlgmr.msra.gmra.mrb[0].mxu0 %vm216_vm1, %v207_v41 }
 0x1d3   :  { %v403_v45 = vpop.f32.mrb[0].mxu0 }
 0x1d4   :  { %v314_v46 = vadd.f32 %v403_v45, %v312_v43  ;;  %v289_v47 = vpop.f32.mrb[1].mxu0 }
 0x1d5   :  { %v313_v48 = vadd.f32 %v311_v44, %v289_v47 }
 0x1d6   :  { %316 = vst.msk [vmem:[#allocation3 + $0x8] sm:$0xff] %vm22_vm0, %v314_v46 }
 0x1d7   :  { %315 = vst.msk [vmem:[#allocation3] sm:$0xff] %vm22_vm0, %v313_v48 }
 0x1d8   :  { %459 = shalt.err (!%p456_p4)
}
 0x1d9   :  { %s460_s26 = scalar_lea.hbm %s579_s4, 256 }
 0x1da   :  { %p461_p5 = scmp.ne.s32.totalorder %s579_s4, %s460_s26  ;;  %p464_p6 = scmp.lt.u32.totalorder %s460_s26, %s579_s4 }
 0x1dc   :  { %p466_p7 = pnand %p464_p6, %p461_p5 }
 0x1de   :  { %469 = shalt.err (!%p466_p7)
}
 0x1df   :  { %s474_s30 = smov 128   ;;  %s475_s5 = smov 8  }
 0x1e0   :  { %328 = dma.vmem_to_hbm [thread:$0]  %s323_s22, 256, %s579_s4, [#allocation4], %s474_s30, %s474_s30, %s475_s5  }
 0x1e1   :  { %470 = dma.done.wait [#allocation4], 256  }
 0x1e2   :  { %471 = vsyncadd [#allocation4], 4294967040 }
 0x1e3   :  { %332 = vsyncpa [#allocation4], 1 }

</bundles_post_ra>
